<compile_context>
chip_gen: v5e
topology: v5e:2x2
jax: 0.10.0
libtpu: 0.0.40
codegen_flags: <defaults>
</compile_context>

<pallas_src>
import jax
import jax.numpy as jnp
from jax.experimental import pallas as pl
from jax.experimental.pallas import tpu as pltpu

# "num_movies" comes from the dataset in the original script; use a small
# deterministic synthetic value that is lane-friendly (multiple of 128).
NUM_MOVIES = 256
H1 = 20
H2 = 10
_MIB = 1024 * 1024


def _sigmoid_f32(x):
    # Numerically stable sigmoid: clamp so exp never overflows (also protects the
    # garbage rows of a ragged last block).  exp goes to the EUP.
    x = jnp.clip(x, -30.0, 30.0)
    return 1.0 / (1.0 + jnp.exp(-x))


def sae_kernel(x_ref,
               w1_ref, b1_ref,
               w2_ref, b2_ref,
               w3_ref, b3_ref,
               w4_ref, b4_ref,
               o_ref):
    # Whole forward pass: 4 MXU matmuls with bf16 operands / f32 accumulation,
    # sigmoid + bias in f32 on the VPU/EUP.
    xb = x_ref[...].astype(jnp.bfloat16)
    h = _sigmoid_f32(
        jnp.dot(xb, w1_ref[...], preferred_element_type=jnp.float32) + b1_ref[...])
    h = _sigmoid_f32(
        jnp.dot(h.astype(jnp.bfloat16), w2_ref[...],
                preferred_element_type=jnp.float32) + b2_ref[...])
    h = _sigmoid_f32(
        jnp.dot(h.astype(jnp.bfloat16), w3_ref[...],
                preferred_element_type=jnp.float32) + b3_ref[...])
    out = jnp.dot(h.astype(jnp.bfloat16), w4_ref[...],
                  preferred_element_type=jnp.float32) + b4_ref[...]
    o_ref[...] = out.astype(o_ref.dtype)


def _round_up(n, m):
    return ((n + m - 1) // m) * m


def _choose_tile(batch, batch_tile):
    """Pick a batch tile that is layout-legal and keeps both v7x TCs busy."""
    SUB = 16  # multiple of 16 covers bf16 (16,128) and f32 (8,128) sublane rules
    cap = max(SUB, min(int(batch_tile), 4096))
    cap = _round_up(cap, SUB)
    if batch > cap:
        # Multi-step grid; the last block may be ragged (handled by Pallas).
        return cap
    # Batch fits in one tile.  If it is big enough and splits evenly into two
    # SUB-aligned halves, use two grid steps so both v7x TensorCores get work.
    half = batch // 2
    if batch >= 8 * SUB and half % SUB == 0:
        return half
    # Single full-array block (always layout-legal, no padding, no extra copies).
    return batch


def sae_forward(x, params, *, batch_tile=2048, out_dtype=None):
    """x: [B, NUM_MOVIES]; params: weights (in,out) and biases (1,out) in f32.

    Returns [B, NUM_MOVIES] in `out_dtype` (defaults to x.dtype).  Matmuls use
    bf16 operands with f32 accumulation; elementwise math is f32.
    """
    B, F = x.shape
    assert F == NUM_MOVIES
    out_dtype = x.dtype if out_dtype is None else out_dtype

    tile = _choose_tile(B, batch_tile)
    num_steps = pl.cdiv(B, tile)

    # Cast the (tiny) weights once to bf16 for the MXU; biases stay f32.
    w1 = params["w1"].astype(jnp.bfloat16)
    w2 = params["w2"].astype(jnp.bfloat16)
    w3 = params["w3"].astype(jnp.bfloat16)
    w4 = params["w4"].astype(jnp.bfloat16)
    b1 = params["b1"].astype(jnp.float32)
    b2 = params["b2"].astype(jnp.float32)
    b3 = params["b3"].astype(jnp.float32)
    b4 = params["b4"].astype(jnp.float32)
    small_args = (w1, b1, w2, b2, w3, b3, w4, b4)

    def rep_spec(arr):
        # Full-array block + constant index_map: fetched once, grid-invariant.
        return pl.BlockSpec(arr.shape, lambda i: (0, 0))

    # VMEM budget from the actual footprint (double-buffered x/out tiles + params
    # + f32 intermediate headroom), capped well below v7x's 64 MiB per TC.
    isz = lambda dt: jnp.dtype(dt).itemsize
    io_bytes = 2 * tile * F * (isz(x.dtype) + isz(out_dtype))
    param_bytes = 2 * sum(int(a.size) * isz(a.dtype) for a in small_args)
    scratch_bytes = 4 * tile * F * 4
    vmem_limit = int(min(48 * _MIB,
                         max(16 * _MIB, io_bytes + param_bytes + scratch_bytes)))

    out = pl.pallas_call(
        sae_kernel,
        out_shape=jax.ShapeDtypeStruct((B, F), out_dtype),
        grid_spec=pltpu.PrefetchScalarGridSpec(
            num_scalar_prefetch=0,
            grid=(num_steps,),
            in_specs=[
                pl.BlockSpec((tile, F), lambda i: (i, 0)),   # x tile over the batch
                rep_spec(w1), rep_spec(b1),
                rep_spec(w2), rep_spec(b2),
                rep_spec(w3), rep_spec(b3),
                rep_spec(w4), rep_spec(b4),
            ],
            out_specs=pl.BlockSpec((tile, F), lambda i: (i, 0)),
        ),
        compiler_params=pltpu.CompilerParams(
            dimension_semantics=("parallel",),   # batch axis: independent steps
            vmem_limit_bytes=vmem_limit,
        ),
    )(x, *small_args)

    return out


def init_params(key):
    """Deterministic synthetic init (PyTorch nn.Linear-style uniform bounds)."""
    def linear(key, fan_in, fan_out):
        kw, kb = jax.random.split(key)
        bound = 1.0 / jnp.sqrt(fan_in)
        w = jax.random.uniform(kw, (fan_in, fan_out), jnp.float32, -bound, bound)
        b = jax.random.uniform(kb, (1, fan_out), jnp.float32, -bound, bound)
        return w, b

    k1, k2, k3, k4 = jax.random.split(key, 4)
    w1, b1 = linear(k1, NUM_MOVIES, H1)
    w2, b2 = linear(k2, H1, H2)
    w3, b3 = linear(k3, H2, H1)
    w4, b4 = linear(k4, H1, NUM_MOVIES)
    return dict(w1=w1, b1=b1, w2=w2, b2=b2, w3=w3, b3=b3, w4=w4, b4=b4)


def sae_reference_f32(x, p):
    h = jax.nn.sigmoid(x @ p["w1"] + p["b1"])
    h = jax.nn.sigmoid(h @ p["w2"] + p["b2"])
    h = jax.nn.sigmoid(h @ p["w3"] + p["b3"])
    return h @ p["w4"] + p["b4"]


def sae_reference_bf16(x, p):
    # Same math as the kernel: bf16 dot operands, f32 accumulation, f32 sigmoid.
    def lin(a, w, b):
        return jnp.dot(a.astype(jnp.bfloat16), w.astype(jnp.bfloat16),
                       preferred_element_type=jnp.float32) + b
    h = jax.nn.sigmoid(lin(x, p["w1"], p["b1"]))
    h = jax.nn.sigmoid(lin(h, p["w2"], p["b2"]))
    h = jax.nn.sigmoid(lin(h, p["w3"], p["b3"]))
    return lin(h, p["w4"], p["b4"])


if __name__ == "__main__":
    key = jax.random.PRNGKey(0)
    kx, kp = jax.random.split(key)
    params = init_params(kp)

    # Case 1: small batch, not a multiple of the sublane tile -> single
    # full-array block (no padding, no wrapper casts).
    B = 40
    x = jax.random.uniform(kx, (B, NUM_MOVIES), jnp.float32, 0.0, 5.0)
    out = jax.block_until_ready(sae_forward(x, params))
    assert out.shape == (B, NUM_MOVIES) and out.dtype == jnp.float32

    ref_bf16 = sae_reference_bf16(x, params)
    ref_f32 = sae_reference_f32(x, params)
    assert jnp.allclose(out, ref_bf16, atol=2e-3, rtol=2e-3), \
        "mismatch vs bf16-operand reference"
    assert jnp.allclose(out, ref_f32, atol=5e-2, rtol=5e-2), \
        "mismatch vs f32 reference"

    # Case 2: multi-step grid with a ragged last block (104 rows, tile 32 -> 4
    # steps, last step only 8 valid rows).
    B2 = 104
    x2 = jax.random.uniform(jax.random.PRNGKey(1), (B2, NUM_MOVIES),
                            jnp.float32, 0.0, 5.0)
    out2 = jax.block_until_ready(sae_forward(x2, params, batch_tile=32))
    assert out2.shape == (B2, NUM_MOVIES)
    assert jnp.allclose(out2, sae_reference_bf16(x2, params),
                        atol=2e-3, rtol=2e-3), "multi-tile mismatch"

    print("KERNEL_OK")
</pallas_src>

<mosaic_0001>
module attributes {stable_mosaic.version = 11 : i64} {
  func.func @sae_kernel(%arg0: i32, %arg1: memref<40x256xf32, #tpu.memory_space<vmem>>, %arg2: memref<256x20xbf16, #tpu.memory_space<vmem>>, %arg3: memref<1x20xf32, #tpu.memory_space<vmem>>, %arg4: memref<20x10xbf16, #tpu.memory_space<vmem>>, %arg5: memref<1x10xf32, #tpu.memory_space<vmem>>, %arg6: memref<10x20xbf16, #tpu.memory_space<vmem>>, %arg7: memref<1x20xf32, #tpu.memory_space<vmem>>, %arg8: memref<20x256xbf16, #tpu.memory_space<vmem>>, %arg9: memref<1x256xf32, #tpu.memory_space<vmem>>, %arg10: memref<40x256xf32, #tpu.memory_space<vmem>>) attributes {dimension_semantics = [#tpu.dimension_semantics<parallel>], iteration_bounds = array<i64: 1>, scalar_prefetch = 0 : i64, scratch_operands = 0 : i64, tpu.core_type = #tpu.core_type<tc>, window_params = [{transform_indices = @transform_0, window_bounds = array<i64: 40, 256>}, {pipeline_mode = #tpu.pipeline_mode<synchronous>, transform_indices = @transform_1, window_bounds = array<i64: 256, 20>}, {pipeline_mode = #tpu.pipeline_mode<synchronous>, transform_indices = @transform_2, window_bounds = array<i64: 1, 20>}, {pipeline_mode = #tpu.pipeline_mode<synchronous>, transform_indices = @transform_3, window_bounds = array<i64: 20, 10>}, {pipeline_mode = #tpu.pipeline_mode<synchronous>, transform_indices = @transform_4, window_bounds = array<i64: 1, 10>}, {pipeline_mode = #tpu.pipeline_mode<synchronous>, transform_indices = @transform_5, window_bounds = array<i64: 10, 20>}, {pipeline_mode = #tpu.pipeline_mode<synchronous>, transform_indices = @transform_6, window_bounds = array<i64: 1, 20>}, {pipeline_mode = #tpu.pipeline_mode<synchronous>, transform_indices = @transform_7, window_bounds = array<i64: 20, 256>}, {pipeline_mode = #tpu.pipeline_mode<synchronous>, transform_indices = @transform_8, window_bounds = array<i64: 1, 256>}, {transform_indices = @transform_9, window_bounds = array<i64: 40, 256>}]} {
    %c0 = arith.constant 0 : index
    %c0_0 = arith.constant 0 : index
    %0 = vector.load %arg1[%c0, %c0_0] : memref<40x256xf32, #tpu.memory_space<vmem>>, vector<40x256xf32>
    %1 = arith.truncf %0 : vector<40x256xf32> to vector<40x256xbf16>
    %c0_1 = arith.constant 0 : index
    %c0_2 = arith.constant 0 : index
    %2 = vector.load %arg2[%c0_1, %c0_2] : memref<256x20xbf16, #tpu.memory_space<vmem>>, vector<256x20xbf16>
    %cst = arith.constant dense<0.000000e+00> : vector<40x20xf32>
    %3 = tpu.matmul %1, %2, %cst {dimension_numbers = #tpu.dot_dimension_numbers<[1], [0], [0], [1], [0, 0, 1, 1], [], []>} : vector<40x256xbf16>, vector<256x20xbf16>, vector<40x20xf32> -> vector<40x20xf32>
    %c0_3 = arith.constant 0 : index
    %c0_4 = arith.constant 0 : index
    %4 = vector.load %arg3[%c0_3, %c0_4] : memref<1x20xf32, #tpu.memory_space<vmem>>, vector<1x20xf32>
    %5 = vector.broadcast %4 : vector<1x20xf32> to vector<40x20xf32>
    %6 = arith.addf %3, %5 : vector<40x20xf32>
    %cst_5 = arith.constant -3.000000e+01 : f32
    %cst_6 = arith.constant 3.000000e+01 : f32
    %7 = vector.broadcast %cst_5 : f32 to vector<40x20xf32>
    %8 = arith.maximumf %7, %6 : vector<40x20xf32>
    %9 = vector.broadcast %cst_6 : f32 to vector<40x20xf32>
    %10 = arith.minimumf %9, %8 : vector<40x20xf32>
    %cst_7 = arith.constant 0.000000e+00 : f32
    %11 = vector.broadcast %cst_7 : f32 to vector<40x20xf32>
    %12 = arith.subf %11, %10 : vector<40x20xf32>
    %13 = math.exp %12 : vector<40x20xf32>
    %cst_8 = arith.constant 1.000000e+00 : f32
    %14 = vector.broadcast %cst_8 : f32 to vector<40x20xf32>
    %15 = arith.addf %14, %13 : vector<40x20xf32>
    %cst_9 = arith.constant 1.000000e+00 : f32
    %16 = vector.broadcast %cst_9 : f32 to vector<40x20xf32>
    %17 = arith.divf %16, %15 : vector<40x20xf32>
    %18 = arith.truncf %17 : vector<40x20xf32> to vector<40x20xbf16>
    %c0_10 = arith.constant 0 : index
    %c0_11 = arith.constant 0 : index
    %19 = vector.load %arg4[%c0_10, %c0_11] : memref<20x10xbf16, #tpu.memory_space<vmem>>, vector<20x10xbf16>
    %cst_12 = arith.constant dense<0.000000e+00> : vector<40x10xf32>
    %20 = tpu.matmul %18, %19, %cst_12 {dimension_numbers = #tpu.dot_dimension_numbers<[1], [0], [0], [1], [0, 0, 1, 1], [], []>} : vector<40x20xbf16>, vector<20x10xbf16>, vector<40x10xf32> -> vector<40x10xf32>
    %c0_13 = arith.constant 0 : index
    %c0_14 = arith.constant 0 : index
    %21 = vector.load %arg5[%c0_13, %c0_14] : memref<1x10xf32, #tpu.memory_space<vmem>>, vector<1x10xf32>
    %22 = vector.broadcast %21 : vector<1x10xf32> to vector<40x10xf32>
    %23 = arith.addf %20, %22 : vector<40x10xf32>
    %cst_15 = arith.constant -3.000000e+01 : f32
    %cst_16 = arith.constant 3.000000e+01 : f32
    %24 = vector.broadcast %cst_15 : f32 to vector<40x10xf32>
    %25 = arith.maximumf %24, %23 : vector<40x10xf32>
    %26 = vector.broadcast %cst_16 : f32 to vector<40x10xf32>
    %27 = arith.minimumf %26, %25 : vector<40x10xf32>
    %cst_17 = arith.constant 0.000000e+00 : f32
    %28 = vector.broadcast %cst_17 : f32 to vector<40x10xf32>
    %29 = arith.subf %28, %27 : vector<40x10xf32>
    %30 = math.exp %29 : vector<40x10xf32>
    %cst_18 = arith.constant 1.000000e+00 : f32
    %31 = vector.broadcast %cst_18 : f32 to vector<40x10xf32>
    %32 = arith.addf %31, %30 : vector<40x10xf32>
    %cst_19 = arith.constant 1.000000e+00 : f32
    %33 = vector.broadcast %cst_19 : f32 to vector<40x10xf32>
    %34 = arith.divf %33, %32 : vector<40x10xf32>
    %35 = arith.truncf %34 : vector<40x10xf32> to vector<40x10xbf16>
    %c0_20 = arith.constant 0 : index
    %c0_21 = arith.constant 0 : index
    %36 = vector.load %arg6[%c0_20, %c0_21] : memref<10x20xbf16, #tpu.memory_space<vmem>>, vector<10x20xbf16>
    %cst_22 = arith.constant dense<0.000000e+00> : vector<40x20xf32>
    %37 = tpu.matmul %35, %36, %cst_22 {dimension_numbers = #tpu.dot_dimension_numbers<[1], [0], [0], [1], [0, 0, 1, 1], [], []>} : vector<40x10xbf16>, vector<10x20xbf16>, vector<40x20xf32> -> vector<40x20xf32>
    %c0_23 = arith.constant 0 : index
    %c0_24 = arith.constant 0 : index
    %38 = vector.load %arg7[%c0_23, %c0_24] : memref<1x20xf32, #tpu.memory_space<vmem>>, vector<1x20xf32>
    %39 = vector.broadcast %38 : vector<1x20xf32> to vector<40x20xf32>
    %40 = arith.addf %37, %39 : vector<40x20xf32>
    %cst_25 = arith.constant -3.000000e+01 : f32
    %cst_26 = arith.constant 3.000000e+01 : f32
    %41 = vector.broadcast %cst_25 : f32 to vector<40x20xf32>
    %42 = arith.maximumf %41, %40 : vector<40x20xf32>
    %43 = vector.broadcast %cst_26 : f32 to vector<40x20xf32>
    %44 = arith.minimumf %43, %42 : vector<40x20xf32>
    %cst_27 = arith.constant 0.000000e+00 : f32
    %45 = vector.broadcast %cst_27 : f32 to vector<40x20xf32>
    %46 = arith.subf %45, %44 : vector<40x20xf32>
    %47 = math.exp %46 : vector<40x20xf32>
    %cst_28 = arith.constant 1.000000e+00 : f32
    %48 = vector.broadcast %cst_28 : f32 to vector<40x20xf32>
    %49 = arith.addf %48, %47 : vector<40x20xf32>
    %cst_29 = arith.constant 1.000000e+00 : f32
    %50 = vector.broadcast %cst_29 : f32 to vector<40x20xf32>
    %51 = arith.divf %50, %49 : vector<40x20xf32>
    %52 = arith.truncf %51 : vector<40x20xf32> to vector<40x20xbf16>
    %c0_30 = arith.constant 0 : index
    %c0_31 = arith.constant 0 : index
    %53 = vector.load %arg8[%c0_30, %c0_31] : memref<20x256xbf16, #tpu.memory_space<vmem>>, vector<20x256xbf16>
    %cst_32 = arith.constant dense<0.000000e+00> : vector<40x256xf32>
    %54 = tpu.matmul %52, %53, %cst_32 {dimension_numbers = #tpu.dot_dimension_numbers<[1], [0], [0], [1], [0, 0, 1, 1], [], []>} : vector<40x20xbf16>, vector<20x256xbf16>, vector<40x256xf32> -> vector<40x256xf32>
    %c0_33 = arith.constant 0 : index
    %c0_34 = arith.constant 0 : index
    %55 = vector.load %arg9[%c0_33, %c0_34] : memref<1x256xf32, #tpu.memory_space<vmem>>, vector<1x256xf32>
    %56 = vector.broadcast %55 : vector<1x256xf32> to vector<40x256xf32>
    %57 = arith.addf %54, %56 : vector<40x256xf32>
    %c0_35 = arith.constant 0 : index
    %c0_36 = arith.constant 0 : index
    %58 = vector.load %arg10[%c0_35, %c0_36] : memref<40x256xf32, #tpu.memory_space<vmem>>, vector<40x256xf32>
    tpu.vector_store %arg10[%c0_35, %c0_36], %57 {strides = array<i32>} : memref<40x256xf32, #tpu.memory_space<vmem>>, vector<40x256xf32>,
    return
  }
  func.func @transform_0(%arg0: i32) -> (i32, i32) {
    %c0_i32 = arith.constant 0 : i32
    %c0_i32_0 = arith.constant 0 : i32
    return %arg0, %c0_i32 : i32, i32
  }
  func.func @transform_1(%arg0: i32) -> (i32, i32) {
    %c0_i32 = arith.constant 0 : i32
    %c0_i32_0 = arith.constant 0 : i32
    %c0_i32_1 = arith.constant 0 : i32
    return %c0_i32, %c0_i32_0 : i32, i32
  }
  func.func @transform_2(%arg0: i32) -> (i32, i32) {
    %c0_i32 = arith.constant 0 : i32
    %c0_i32_0 = arith.constant 0 : i32
    %c0_i32_1 = arith.constant 0 : i32
    return %c0_i32, %c0_i32_0 : i32, i32
  }
  func.func @transform_3(%arg0: i32) -> (i32, i32) {
    %c0_i32 = arith.constant 0 : i32
    %c0_i32_0 = arith.constant 0 : i32
    %c0_i32_1 = arith.constant 0 : i32
    return %c0_i32, %c0_i32_0 : i32, i32
  }
  func.func @transform_4(%arg0: i32) -> (i32, i32) {
    %c0_i32 = arith.constant 0 : i32
    %c0_i32_0 = arith.constant 0 : i32
    %c0_i32_1 = arith.constant 0 : i32
    return %c0_i32, %c0_i32_0 : i32, i32
  }
  func.func @transform_5(%arg0: i32) -> (i32, i32) {
    %c0_i32 = arith.constant 0 : i32
    %c0_i32_0 = arith.constant 0 : i32
    %c0_i32_1 = arith.constant 0 : i32
    return %c0_i32, %c0_i32_0 : i32, i32
  }
  func.func @transform_6(%arg0: i32) -> (i32, i32) {
    %c0_i32 = arith.constant 0 : i32
    %c0_i32_0 = arith.constant 0 : i32
    %c0_i32_1 = arith.constant 0 : i32
    return %c0_i32, %c0_i32_0 : i32, i32
  }
  func.func @transform_7(%arg0: i32) -> (i32, i32) {
    %c0_i32 = arith.constant 0 : i32
    %c0_i32_0 = arith.constant 0 : i32
    %c0_i32_1 = arith.constant 0 : i32
    return %c0_i32, %c0_i32_0 : i32, i32
  }
  func.func @transform_8(%arg0: i32) -> (i32, i32) {
    %c0_i32 = arith.constant 0 : i32
    %c0_i32_0 = arith.constant 0 : i32
    %c0_i32_1 = arith.constant 0 : i32
    return %c0_i32, %c0_i32_0 : i32, i32
  }
  func.func @transform_9(%arg0: i32) -> (i32, i32) {
    %c0_i32 = arith.constant 0 : i32
    %c0_i32_0 = arith.constant 0 : i32
    return %arg0, %c0_i32 : i32, i32
  }
}

</mosaic_0001>

<bundles_post_ra>
// kernel: tpu_custom_call.1
= control target key start
LH: loop header
LB: loop body
LE: loop exit
PB: predicated region body
PF: predicated region fallthrough
CT: control target
= control target key end

     0   :  { %s1212_s0 = inlined_call_operand.vmem [shape: f32[40,256], index: 0, kind: input, shape index: {}]   ;;  %s1213_s1 = inlined_call_operand.vmem [shape: bf16[256,20], index: 1, kind: input, shape index: {}]   ;;  %s1214_s2 = inlined_call_operand.vmem [shape: f32[1,20], index: 2, kind: input, shape index: {}]   ;;  %s1215_s3 = inlined_call_operand.vmem [shape: bf16[20,10], index: 3, kind: input, shape index: {}]   ;;  %s1216_s4 = inlined_call_operand.vmem [shape: f32[1,10], index: 4, kind: input, shape index: {}]   ;;  %s1217_s5 = inlined_call_operand.vmem [shape: bf16[10,20], index: 5, kind: input, shape index: {}]   ;;  %s1218_s6 = inlined_call_operand.vmem [shape: f32[1,20], index: 6, kind: input, shape index: {}]   ;;  %s1219_s7 = inlined_call_operand.vmem [shape: bf16[20,256], index: 7, kind: input, shape index: {}]   ;;  %s1220_s8 = inlined_call_operand.vmem [shape: f32[1,256], index: 8, kind: input, shape index: {}]   ;;  %s1221_s9 = inlined_call_operand.hbm [shape: f32[40,256], index: 9, kind: output, shape index: {}]  }
   0x1   :  { %v880_v0 = vld [vmem:[%s1213_s1 + $0x38] sm:$0xff]  ;;  %v879_v2 = vld [vmem:[%s1213_s1 + $0x30] sm:$0xff]  ;;  %v878_v4 = vld [vmem:[%s1213_s1 + $0x28] sm:$0xff] }
   0x2   :  { %v888_v1 = vld [vmem:[%s1213_s1 + $0x78] sm:$0xff]  ;;  %182 = vmatpush.bf16.msra.mxu0 %v880_v0  ;;  %v887_v3 = vld [vmem:[%s1213_s1 + $0x70] sm:$0xff]  ;;  %v886_v5 = vld [vmem:[%s1213_s1 + $0x68] sm:$0xff] }
   0x3   :  { %205 = vmatpush.bf16.msra.mxu1 %v888_v1 }
   0x6   :  { %183 = vmatpush.bf16.msra.mxu0 %v879_v2 }
   0x7   :  { %206 = vmatpush.bf16.msra.mxu1 %v887_v3 }
   0x8   :  { %14 = vsyncpa [#allocation3], 0  ;;  %v877_v6 = vld [vmem:[%s1213_s1 + $0x20] sm:$0xff]  ;;  %v876_v8 = vld [vmem:[%s1213_s1 + $0x18] sm:$0xff]  ;;  %vm362_vm0 = vcmask 1041408   ;;  %vm352_vm9 = vcmask 162816  }
   0x9   :  { %v885_v7 = vld [vmem:[%s1213_s1 + $0x60] sm:$0xff]  ;;  %v884_v9 = vld [vmem:[%s1213_s1 + $0x58] sm:$0xff]  ;;  %v875_v10 = vld [vmem:[%s1213_s1 + $0x10] sm:$0xff]  ;;  %s754_s18 = sshll.u32 %s1221_s9, 4  ;;  %s986_s19 = smov 256   ;;  %s755_s18 = int_to_ptr.hbm [resolvable:$true] %s754_s18 }
   0xa   :  { %184 = vmatpush.bf16.msra.mxu0 %v878_v4  ;;  %v883_v11 = vld [vmem:[%s1213_s1 + $0x50] sm:$0xff]  ;;  %v874_v12 = vld [vmem:[%s1213_s1 + $0x8] sm:$0xff]  ;;  %v873_v14 = vld [vmem:[%s1213_s1] sm:$0xff]  ;;  %s987_s20 = smov 16  }
   0xb   :  { %207 = vmatpush.bf16.msra.mxu1 %v886_v5  ;;  %v882_v13 = vld [vmem:[%s1213_s1 + $0x48] sm:$0xff]  ;;  %v881_v15 = vld [vmem:[%s1213_s1 + $0x40] sm:$0xff]  ;;  %v36_v17 = vld [vmem:[%s1212_s0 + $0x10] sm:$0xff] }
   0xc   :  { %v34_v16 = vld [vmem:[%s1212_s0] sm:$0xff]  ;;  %v35_v18 = vld [vmem:[%s1212_s0 + $0x8] sm:$0xff]  ;;  %v37_v19 = vld [vmem:[%s1212_s0 + $0x18] sm:$0xff] }
   0xd   :  { %v44_v20 = vpack.c.bf16 %v36_v17, %v34_v16  ;;  %v45_v21 = vpack.c.bf16 %v37_v19, %v35_v18  ;;  %v38_v22 = vld [vmem:[%s1212_s0 + $0x20] sm:$0xff]  ;;  %v40_v23 = vld [vmem:[%s1212_s0 + $0x30] sm:$0xff]  ;;  %v39_v24 = vld [vmem:[%s1212_s0 + $0x28] sm:$0xff] }
   0xe   :  { %185 = vmatpush.bf16.msra.mxu0 %v877_v6  ;;  %v41_v25 = vld [vmem:[%s1212_s0 + $0x38] sm:$0xff]  ;;  %v46_v26 = vpack.c.bf16 %v40_v23, %v38_v22  ;;  %v42_v28 = vld [vmem:[%s1212_s0 + $0x40] sm:$0xff]  ;;  %v43_v29 = vld [vmem:[%s1212_s0 + $0x48] sm:$0xff] }
   0xf   :  { %208 = vmatpush.bf16.msra.mxu1 %v885_v7  ;;  %v47_v27 = vpack.c.bf16 %v41_v25, %v39_v24  ;;  %v48_v30 = vpack.c.bf16 %v42_v28, %v42_v28  ;;  %v49_v31 = vpack.c.bf16 %v43_v29, %v43_v29  ;;  %v896_v32 = vld [vmem:[%s1214_s2] ss:$0 sm:$0xff]  ;;  %v338_v36 = vld [vmem:[%s1215_s3 + $0x8] sm:$0x3] }
  0x10   :  { %v348_v38 = vunpack.c.l.b16 %v338_v36  ;;  %v889_v47 = vld [vmem:[%s1215_s3] sm:$0xff] }
  0x12   :  { %186 = vmatpush.bf16.msra.mxu0 %v876_v8  ;;  %v350_v40 = vpack.c.b16 %v348_v38, %v348_v38 }
  0x13   :  { %209 = vmatpush.bf16.msra.mxu1 %v884_v9 }
  0x14   :  { %v364_v42 = vsel %vm362_vm0, %v350_v40, 0 }
  0x15   :  { %372 = vmatpush.bf16.msra.mxu2 %v364_v42 }
  0x16   :  { %187 = vmatpush.bf16.msra.mxu0 %v875_v10 }
  0x17   :  { %210 = vmatpush.bf16.msra.mxu1 %v883_v11 }
  0x19   :  { %373 = vmatpush.bf16.msra.mxu2 %v889_v47 }
  0x1a   :  { %188 = vmatpush.bf16.msra.mxu0 %v874_v12 }
  0x1b   :  { %211 = vmatpush.bf16.msra.mxu1 %v882_v13 }
  0x1e   :  { %189 = vmatpush.bf16.msra.mxu0 %v873_v14 }
  0x1f   :  { %212 = vmatpush.bf16.msra.mxu1 %v881_v15 }
  0x21   :  { %190 = vmatmul.bf16.vlgmr.msra.gmra.mxu0 %v44_v20 }
  0x22   :  { %213 = vmatmul.bf16.vlgmr.msra.gmra.mxu1 %v45_v21 }
  0x31   :  { %195 = vmatmul.bf16.gmra.mxu0 %v46_v26 }
  0x32   :  { %218 = vmatmul.bf16.gmra.mxu1 %v47_v27 }
  0x41   :  { %200 = vmatmul.bf16.gmra.mxu0 %v48_v30 }
  0x42   :  { %223 = vmatmul.bf16.gmra.mxu1 %v49_v31 }
  0x9e   :  { %v191_v33 = vpop.f32.mrf.mxu0 }
  0x9f   :  { %v214_v34 = vpop.f32.mrf.mxu1  ;;  %v192_v35 = vadd.f32 %v896_v32, %v191_v33 }
  0xa1   :  { %v215_v37 = vadd.f32 %v214_v34, %v192_v35 }
  0xa3   :  { %v830_v39 = vclamps-f32 %v215_v37, 30.0 }
  0xa5   :  { %v238_v41 = vsub.f32 0.0, %v830_v39 }
  0xa6   :  { %v193_v43 = vpop.f32.mrf.mxu0 }
  0xa7   :  { %v216_v44 = vpop.f32.mrf.mxu1  ;;  %v243_v45 = vmul.f32 1.442695, %v238_v41  ;;  %v194_v46 = vadd.f32 %v896_v32, %v193_v43 }
  0xa9   :  { %899 = vpow2.f32 %v243_v45  ;;  %v217_v48 = vadd.f32 %v216_v44, %v194_v46 }
  0xab   :  { %v831_v49 = vclamps-f32 %v217_v48, 30.0 }
  0xad   :  { %v239_v50 = vsub.f32 0.0, %v831_v49 }
  0xae   :  { %v196_v51 = vpop.f32.mrf.mxu0 }
  0xaf   :  { %v219_v52 = vpop.f32.mrf.mxu1  ;;  %v900_v53 = vpop.eup %899  ;;  %v245_v54 = vmul.f32 1.442695, %v239_v50  ;;  %v197_v55 = vadd.f32 %v896_v32, %v196_v51 }
  0xb0   :  { %v253_v56 = vadd.f32 1.0, %v900_v53 }
  0xb1   :  { %901 = vpow2.f32 %v245_v54  ;;  %v220_v57 = vadd.f32 %v219_v52, %v197_v55 }
  0xb2   :  { %903 = vrcp.f32 %v253_v56  ;;  %vm263_vm2 = vweird.f32 %v253_v56  ;;  %v267_v21 = vand.u32 2147483647, %v253_v56  ;;  %v269_v22 = vand.u32 2147483648, %v253_v56 }
  0xb3   :  { %v832_v58 = vclamps-f32 %v220_v57, 30.0 }
  0xb4   :  { %vm268_vm6 = vcmp.eq.f32.partialorder %v267_v21, 8.507059e+37  ;;  %v270_v36 = vor.u32 1.1754944e-38, %v269_v22 }
  0xb5   :  { %v240_v59 = vsub.f32 0.0, %v832_v58 }
  0xb6   :  { %v198_v60 = vpop.f32.mrf.mxu0 }
  0xb7   :  { %v221_v61 = vpop.f32.mrf.mxu1  ;;  %v902_v62 = vpop.eup %901  ;;  %v247_v63 = vmul.f32 1.442695, %v240_v59  ;;  %v199_v0 = vadd.f32 %v896_v32, %v198_v60 }
  0xb8   :  { %v904_v1 = vpop.eup %903  ;;  %v254_v2 = vadd.f32 1.0, %v902_v62 }
  0xb9   :  { %905 = vpow2.f32 %v247_v63  ;;  %v222_v3 = vadd.f32 %v221_v61, %v199_v0  ;;  %v259_v4 = vmul.f32 %v904_v1, %v253_v56  ;;  %vm264_vm1 = vweird.f32 %v904_v1 }
  0xba   :  { %907 = vrcp.f32 %v254_v2  ;;  %v284_v23 = vand.u32 2147483648, %v254_v2  ;;  %v282_v26 = vand.u32 2147483647, %v254_v2  ;;  %vm1129_vm4 = vmor %vm263_vm2, %vm264_vm1  ;;  %vm278_vm5 = vweird.f32 %v254_v2 }
  0xbb   :  { %v833_v5 = vclamps-f32 %v222_v3, 30.0  ;;  %v260_v6 = vsub.f32 1.0, %v259_v4 }
  0xbc   :  { %v285_v37 = vor.u32 1.1754944e-38, %v284_v23  ;;  %vm283_vm8 = vcmp.eq.f32.partialorder %v282_v26, 8.507059e+37 }
  0xbd   :  { %v241_v7 = vsub.f32 0.0, %v833_v5  ;;  %v261_v13 = vmul.f32 %v904_v1, %v260_v6 }
  0xbe   :  { %v201_v8 = vpop.f32.mrf.mxu0 }
  0xbf   :  { %v224_v9 = vpop.f32.mrf.mxu1  ;;  %v906_v10 = vpop.eup %905  ;;  %v249_v11 = vmul.f32 1.442695, %v241_v7  ;;  %v202_v12 = vadd.f32 %v896_v32, %v201_v8  ;;  %v262_v19 = vadd.f32 %v904_v1, %v261_v13 }
  0xc0   :  { %v908_v14 = vpop.eup %907  ;;  %v1126_v15 = vadd.f32 1.0, %v906_v10 }
  0xc1   :  { %909 = vpow2.f32 %v249_v11  ;;  %v225_v16 = vadd.f32 %v224_v9, %v202_v12  ;;  %v274_v17 = vmul.f32 %v908_v14, %v254_v2  ;;  %vm279_vm3 = vweird.f32 %v908_v14  ;;  %v897_v11 = vld [vmem:[%s1216_s4] ss:$0 sm:$0xff] }
  0xc2   :  { %911 = vrcp.f32 %v1126_v15  ;;  %v266_v32 = vsel %vm1129_vm4, %v904_v1, %v262_v19  ;;  %vm280_vm7 = vmor %vm278_vm5, %vm279_vm3  ;;  %vm293_vm11 = vweird.f32 %v1126_v15  ;;  %v299_v51 = vand.u32 2147483648, %v1126_v15 }
  0xc3   :  { %v834_v18 = vclamps-f32 %v225_v16, 30.0  ;;  %v275_v20 = vsub.f32 1.0, %v274_v17  ;;  %v271_v40 = vsel %vm268_vm6, %v270_v36, %v266_v32  ;;  %v297_v53 = vand.u32 2147483647, %v1126_v15  ;;  %v849_v17 = vld [vmem:[%s1217_s5] sm:$0xf] }
  0xc4   :  { %v300_v59 = vor.u32 1.1754944e-38, %v299_v51 }
  0xc5   :  { %v242_v24 = vsub.f32 0.0, %v834_v18  ;;  %v276_v25 = vmul.f32 %v908_v14, %v275_v20  ;;  %vm298_vm1 = vcmp.eq.f32.partialorder %v297_v53, 8.507059e+37  ;;  %v890_v18 = vld [vmem:[%s1217_s5] sm:$0x10] }
  0xc6   :  { %v203_v28 = vpop.f32.mrf.mxu0  ;;  %v850_v20 = vor.u32 %v890_v18, %v849_v17 }
  0xc7   :  { %v226_v29 = vpop.f32.mrf.mxu1  ;;  %v910_v30 = vpop.eup %909  ;;  %v251_v31 = vmul.f32 1.442695, %v242_v24  ;;  %v277_v33 = vadd.f32 %v908_v14, %v276_v25 }
  0xc8   :  { %v912_v34 = vpop.eup %911  ;;  %v256_v35 = vadd.f32 1.0, %v910_v30 }
  0xc9   :  { %913 = vpow2.f32 %v251_v31  ;;  %v281_v38 = vsel %vm280_vm7, %v908_v14, %v277_v33  ;;  %v289_v39 = vmul.f32 %v912_v34, %v1126_v15  ;;  %vm294_vm10 = vweird.f32 %v912_v34 }
  0xca   :  { %915 = vrcp.f32 %v256_v35  ;;  %v286_v41 = vsel %vm283_vm8, %v285_v37, %v281_v38  ;;  %v314_v52 = vand.u32 2147483648, %v256_v35  ;;  %v312_v55 = vand.u32 2147483647, %v256_v35  ;;  %vm295_vm13 = vmor %vm293_vm11, %vm294_vm10 }
  0xcb   :  { %v333_v42 = vpack.c.bf16 %v286_v41, %v271_v40  ;;  %v290_v43 = vsub.f32 1.0, %v289_v39  ;;  %vm308_vm14 = vweird.f32 %v256_v35  ;;  %vm518_vm7 = vcmask 1044480  }
  0xcc   :  { %v315_v60 = vor.u32 1.1754944e-38, %v314_v52  ;;  %vm313_vm2 = vcmp.eq.f32.partialorder %v312_v55, 8.507059e+37  ;;  %v520_v22 = vsel %vm518_vm7, %v850_v20, 0 }
  0xcd   :  { %839 = vmatmul.msk.bf16.vlgmr.msra.gmra.mxu2 %vm352_vm9, %v333_v42  ;;  %v291_v45 = vmul.f32 %v912_v34, %v290_v43  ;;  %529 = vmatpush.bf16.msra.mxu3 %v520_v22 }
  0xcf   :  { %v914_v44 = vpop.eup %913  ;;  %v292_v49 = vadd.f32 %v912_v34, %v291_v45 }
  0xd0   :  { %v916_v46 = vpop.eup %915  ;;  %v257_v47 = vadd.f32 1.0, %v914_v44 }
  0xd1   :  { %v304_v48 = vmul.f32 %v916_v46, %v256_v35  ;;  %vm309_vm12 = vweird.f32 %v916_v46  ;;  %v296_v56 = vsel %vm295_vm13, %v912_v34, %v292_v49 }
  0xd2   :  { %917 = vrcp.f32 %v257_v47  ;;  %vm310_vm15 = vmor %vm308_vm14, %vm309_vm12  ;;  %v301_v63 = vsel %vm298_vm1, %v300_v59, %v296_v56  ;;  %vm323_vm3 = vweird.f32 %v257_v47  ;;  %v329_v4 = vand.u32 2147483648, %v257_v47 }
  0xd3   :  { %v305_v50 = vsub.f32 1.0, %v304_v48  ;;  %v327_v6 = vand.u32 2147483647, %v257_v47 }
  0xd4   :  { %v330_v7 = vor.u32 1.1754944e-38, %v329_v4 }
  0xd5   :  { %v306_v54 = vmul.f32 %v916_v46, %v305_v50  ;;  %vm328_vm6 = vcmp.eq.f32.partialorder %v327_v6, 8.507059e+37 }
  0xd7   :  { %v307_v57 = vadd.f32 %v916_v46, %v306_v54 }
  0xd8   :  { %v918_v58 = vpop.eup %917 }
  0xd9   :  { %v311_v61 = vsel %vm310_vm15, %v916_v46, %v307_v57  ;;  %v319_v62 = vmul.f32 %v918_v58, %v257_v47  ;;  %vm324_vm4 = vweird.f32 %v918_v58 }
  0xda   :  { %v316_v0 = vsel %vm313_vm2, %v315_v60, %v311_v61  ;;  %vm325_vm5 = vmor %vm323_vm3, %vm324_vm4  ;;  %vm508_vm2 = vcmask 80896  }
  0xdb   :  { %v334_v1 = vpack.c.bf16 %v316_v0, %v301_v63  ;;  %v320_v2 = vsub.f32 1.0, %v319_v62 }
  0xdd   :  { %840 = vmatmul.msk.bf16.gmra.mxu2 %vm352_vm9, %v334_v1  ;;  %v321_v3 = vmul.f32 %v918_v58, %v320_v2 }
  0xdf   :  { %v322_v5 = vadd.f32 %v918_v58, %v321_v3 }
  0xe1   :  { %v326_v8 = vsel %vm325_vm5, %v918_v58, %v322_v5 }
  0xe2   :  { %v331_v9 = vsel %vm328_vm6, %v330_v7, %v326_v8 }
  0xe3   :  { %v335_v10 = vpack.c.bf16 %v331_v9, %v331_v9 }
  0xed   :  { %841 = vmatmul.msk.bf16.gmra.mxu2 %vm352_vm9, %v335_v10 }
 0x150   :  { %v375_v12 = vpop.f32.mrf.mxu2 }
 0x151   :  { %v376_v13 = vadd.f32 %v897_v11, %v375_v12 }
 0x153   :  { %v842_v14 = vclamps-f32 %v376_v13, 30.0 }
 0x155   :  { %v399_v15 = vsub.f32 0.0, %v842_v14 }
 0x157   :  { %v404_v16 = vmul.f32 1.442695, %v399_v15 }
 0x158   :  { %v377_v19 = vpop.f32.mrf.mxu2 }
 0x159   :  { %919 = vpow2.f32 %v404_v16  ;;  %v378_v21 = vadd.f32 %v897_v11, %v377_v19 }
 0x15b   :  { %v843_v23 = vclamps-f32 %v378_v21, 30.0 }
 0x15d   :  { %v400_v24 = vsub.f32 0.0, %v843_v23 }
 0x15f   :  { %v920_v25 = vpop.eup %919  ;;  %v406_v26 = vmul.f32 1.442695, %v400_v24 }
 0x160   :  { %v414_v27 = vadd.f32 1.0, %v920_v25  ;;  %v380_v28 = vpop.f32.mrf.mxu2 }
 0x161   :  { %921 = vpow2.f32 %v406_v26  ;;  %v381_v29 = vadd.f32 %v897_v11, %v380_v28 }
 0x162   :  { %923 = vrcp.f32 %v414_v27  ;;  %vm424_vm10 = vweird.f32 %v414_v27  ;;  %v428_v53 = vand.u32 2147483647, %v414_v27  ;;  %v430_v54 = vand.u32 2147483648, %v414_v27 }
 0x163   :  { %v844_v30 = vclamps-f32 %v381_v29, 30.0 }
 0x164   :  { %vm429_vm14 = vcmp.eq.f32.partialorder %v428_v53, 8.507059e+37  ;;  %v431_v3 = vor.u32 1.1754944e-38, %v430_v54  ;;  %v861_v53 = vld [vmem:[%s1219_s7] sm:$0xf]  ;;  %v892_v54 = vld [vmem:[%s1219_s7 + $0x4] sm:$0xf0] }
 0x165   :  { %v401_v31 = vsub.f32 0.0, %v844_v30 }
 0x167   :  { %v922_v32 = vpop.eup %921  ;;  %v408_v33 = vmul.f32 1.442695, %v401_v31 }
 0x168   :  { %v924_v34 = vpop.eup %923  ;;  %v415_v35 = vadd.f32 1.0, %v922_v32  ;;  %v382_v36 = vpop.f32.mrf.mxu2 }
 0x169   :  { %925 = vpow2.f32 %v408_v33  ;;  %v383_v37 = vadd.f32 %v897_v11, %v382_v36  ;;  %v420_v38 = vmul.f32 %v924_v34, %v414_v27  ;;  %vm425_vm8 = vweird.f32 %v924_v34 }
 0x16a   :  { %927 = vrcp.f32 %v415_v35  ;;  %v445_v55 = vand.u32 2147483648, %v415_v35  ;;  %v443_v58 = vand.u32 2147483647, %v415_v35  ;;  %vm1154_vm12 = vmor %vm424_vm10, %vm425_vm8  ;;  %vm439_vm13 = vweird.f32 %v415_v35 }
 0x16b   :  { %v845_v39 = vclamps-f32 %v383_v37, 30.0  ;;  %v421_v40 = vsub.f32 1.0, %v420_v38 }
 0x16c   :  { %v446_v4 = vor.u32 1.1754944e-38, %v445_v55  ;;  %vm444_vm1 = vcmp.eq.f32.partialorder %v443_v58, 8.507059e+37  ;;  %v862_v55 = vor.u32 %v892_v54, %v861_v53 }
 0x16d   :  { %v402_v41 = vsub.f32 0.0, %v845_v39  ;;  %v422_v44 = vmul.f32 %v924_v34, %v421_v40 }
 0x16f   :  { %v926_v42 = vpop.eup %925  ;;  %v410_v43 = vmul.f32 1.442695, %v402_v41  ;;  %v423_v51 = vadd.f32 %v924_v34, %v422_v44 }
 0x170   :  { %v928_v45 = vpop.eup %927  ;;  %v1151_v46 = vadd.f32 1.0, %v926_v42  ;;  %v385_v47 = vpop.f32.mrf.mxu2 }
 0x171   :  { %929 = vpow2.f32 %v410_v43  ;;  %v386_v48 = vadd.f32 %v897_v11, %v385_v47  ;;  %v435_v49 = vmul.f32 %v928_v45, %v415_v35  ;;  %vm440_vm11 = vweird.f32 %v928_v45  ;;  %v655_v11 = vld [vmem:[%s1219_s7 + $0x10] sm:$0x33] }
 0x172   :  { %931 = vrcp.f32 %v1151_v46  ;;  %v427_v62 = vsel %vm1154_vm12, %v924_v34, %v423_v51  ;;  %vm441_vm15 = vmor %vm439_vm13, %vm440_vm11  ;;  %v669_v12 = vunpack.c.l.b16 %v655_v11  ;;  %v670_v13 = vunpack.c.h.b16 %v655_v11 }
 0x173   :  { %v846_v50 = vclamps-f32 %v386_v48, 30.0  ;;  %v436_v52 = vsub.f32 1.0, %v435_v49  ;;  %v432_v7 = vsel %vm429_vm14, %v431_v3, %v427_v62  ;;  %vm454_vm4 = vweird.f32 %v1151_v46  ;;  %v898_v49 = vld [vmem:[%s1218_s6] ss:$0 sm:$0xff] }
 0x174   :  { %v673_v18 = vpack.c.b16 %v669_v12, %v669_v12  ;;  %v674_v19 = vpack.c.b16 %v670_v13, %v670_v13  ;;  %v460_v25 = vand.u32 2147483648, %v1151_v46  ;;  %v458_v27 = vand.u32 2147483647, %v1151_v46 }
 0x175   :  { %v403_v56 = vsub.f32 0.0, %v846_v50  ;;  %v437_v57 = vmul.f32 %v928_v45, %v436_v52 }
 0x176   :  { %v687_v23 = vsel %vm362_vm0, %v673_v18, 0  ;;  %v690_v24 = vsel %vm362_vm0, %v674_v19, 0  ;;  %v461_v33 = vor.u32 1.1754944e-38, %v460_v25  ;;  %vm459_vm0 = vcmp.eq.f32.partialorder %v458_v27, 8.507059e+37 }
 0x177   :  { %v930_v60 = vpop.eup %929  ;;  %v412_v61 = vmul.f32 1.442695, %v403_v56  ;;  %v438_v63 = vadd.f32 %v928_v45, %v437_v57  ;;  %698 = vmatpush.bf16.msrb.mxu3 %v687_v23  ;;  %721 = vmatpush.bf16.msrb.mxu2 %v690_v24  ;;  %v891_v56 = vld [vmem:[%s1219_s7 + $0x4] sm:$0xf]  ;;  %v863_v57 = vld [vmem:[%s1219_s7 + $0x8] sm:$0xf0] }
 0x178   :  { %v932_v0 = vpop.eup %931  ;;  %v417_v1 = vadd.f32 1.0, %v930_v60  ;;  %v387_v2 = vpop.f32.mrf.mxu2  ;;  %v866_v59 = vor.u32 %v891_v56, %v863_v57 }
 0x179   :  { %933 = vpow2.f32 %v412_v61  ;;  %v442_v5 = vsel %vm441_vm15, %v928_v45, %v438_v63  ;;  %v450_v6 = vmul.f32 %v932_v0, %v1151_v46  ;;  %vm455_vm3 = vweird.f32 %v932_v0 }
 0x17a   :  { %935 = vrcp.f32 %v417_v1  ;;  %v447_v8 = vsel %vm444_vm1, %v446_v4, %v442_v5  ;;  %v475_v26 = vand.u32 2147483648, %v417_v1  ;;  %v473_v29 = vand.u32 2147483647, %v417_v1  ;;  %vm456_vm6 = vmor %vm454_vm4, %vm455_vm3 }
 0x17b   :  { %v494_v9 = vpack.c.bf16 %v447_v8, %v432_v7  ;;  %v451_v10 = vsub.f32 1.0, %v450_v6  ;;  %vm469_vm7 = vweird.f32 %v417_v1  ;;  %699 = vmatpush.bf16.msrb.mxu3 %v862_v55  ;;  %722 = vmatpush.bf16.msrb.mxu2 %v866_v59 }
 0x17c   :  { %v476_v34 = vor.u32 1.1754944e-38, %v475_v26  ;;  %vm474_vm10 = vcmp.eq.f32.partialorder %v473_v29, 8.507059e+37 }
 0x17d   :  { %851 = vmatmul.msk.bf16.vlgmr.msra.gmra.mxu3 %vm508_vm2, %v494_v9  ;;  %v452_v15 = vmul.f32 %v932_v0, %v451_v10 }
 0x17f   :  { %v934_v14 = vpop.eup %933  ;;  %v453_v21 = vadd.f32 %v932_v0, %v452_v15 }
 0x180   :  { %v936_v16 = vpop.eup %935  ;;  %v418_v17 = vadd.f32 1.0, %v934_v14 }
 0x181   :  { %v465_v20 = vmul.f32 %v936_v16, %v417_v1  ;;  %vm470_vm5 = vweird.f32 %v936_v16  ;;  %v457_v30 = vsel %vm456_vm6, %v932_v0, %v453_v21 }
 0x182   :  { %937 = vrcp.f32 %v418_v17  ;;  %vm471_vm8 = vmor %vm469_vm7, %vm470_vm5  ;;  %v462_v37 = vsel %vm459_vm0, %v461_v33, %v457_v30  ;;  %v490_v43 = vand.u32 2147483648, %v418_v17  ;;  %vm484_vm12 = vweird.f32 %v418_v17 }
 0x183   :  { %v466_v22 = vsub.f32 1.0, %v465_v20  ;;  %v488_v44 = vand.u32 2147483647, %v418_v17 }
 0x184   :  { %v491_v46 = vor.u32 1.1754944e-38, %v490_v43 }
 0x185   :  { %v467_v28 = vmul.f32 %v936_v16, %v466_v22  ;;  %vm489_vm14 = vcmp.eq.f32.partialorder %v488_v44, 8.507059e+37 }
 0x187   :  { %v468_v31 = vadd.f32 %v936_v16, %v467_v28 }
 0x188   :  { %v938_v32 = vpop.eup %937 }
 0x189   :  { %v472_v35 = vsel %vm471_vm8, %v936_v16, %v468_v31  ;;  %v480_v36 = vmul.f32 %v938_v32, %v418_v17  ;;  %vm485_vm11 = vweird.f32 %v938_v32 }
 0x18a   :  { %v477_v38 = vsel %vm474_vm10, %v476_v34, %v472_v35  ;;  %vm486_vm13 = vmor %vm484_vm12, %vm485_vm11 }
 0x18b   :  { %v495_v39 = vpack.c.bf16 %v477_v38, %v462_v37  ;;  %v481_v40 = vsub.f32 1.0, %v480_v36 }
 0x18d   :  { %852 = vmatmul.msk.bf16.gmra.mxu3 %vm508_vm2, %v495_v39  ;;  %v482_v41 = vmul.f32 %v938_v32, %v481_v40 }
 0x18f   :  { %v483_v42 = vadd.f32 %v938_v32, %v482_v41 }
 0x191   :  { %v487_v45 = vsel %vm486_vm13, %v938_v32, %v483_v42 }
 0x192   :  { %v492_v47 = vsel %vm489_vm14, %v491_v46, %v487_v45 }
 0x193   :  { %v496_v48 = vpack.c.bf16 %v492_v47, %v492_v47 }
 0x19d   :  { %853 = vmatmul.msk.bf16.gmra.mxu3 %vm508_vm2, %v496_v48 }
 0x200   :  { %v531_v50 = vpop.f32.mrf.mxu3 }
 0x201   :  { %v532_v51 = vadd.f32 %v898_v49, %v531_v50 }
 0x203   :  { %v854_v52 = vclamps-f32 %v532_v51, 30.0 }
 0x205   :  { %v555_v58 = vsub.f32 0.0, %v854_v52 }
 0x207   :  { %v560_v60 = vmul.f32 1.442695, %v555_v58 }
 0x208   :  { %v533_v61 = vpop.f32.mrf.mxu3 }
 0x209   :  { %939 = vpow2.f32 %v560_v60  ;;  %v534_v62 = vadd.f32 %v898_v49, %v533_v61 }
 0x20b   :  { %v855_v63 = vclamps-f32 %v534_v62, 30.0 }
 0x20d   :  { %v556_v0 = vsub.f32 0.0, %v855_v63 }
 0x20f   :  { %v940_v1 = vpop.eup %939  ;;  %v562_v2 = vmul.f32 1.442695, %v556_v0 }
 0x210   :  { %v570_v3 = vadd.f32 1.0, %v940_v1  ;;  %v536_v4 = vpop.f32.mrf.mxu3 }
 0x211   :  { %941 = vpow2.f32 %v562_v2  ;;  %v537_v5 = vadd.f32 %v898_v49, %v536_v4 }
 0x212   :  { %943 = vrcp.f32 %v570_v3  ;;  %vm580_vm1 = vweird.f32 %v570_v3  ;;  %v584_v29 = vand.u32 2147483647, %v570_v3  ;;  %v586_v30 = vand.u32 2147483648, %v570_v3 }
 0x213   :  { %v856_v6 = vclamps-f32 %v537_v5, 30.0 }
 0x214   :  { %vm585_vm5 = vcmp.eq.f32.partialorder %v584_v29, 8.507059e+37  ;;  %v587_v43 = vor.u32 1.1754944e-38, %v586_v30 }
 0x215   :  { %v557_v7 = vsub.f32 0.0, %v856_v6 }
 0x217   :  { %v942_v8 = vpop.eup %941  ;;  %v564_v9 = vmul.f32 1.442695, %v557_v7 }
 0x218   :  { %v944_v10 = vpop.eup %943  ;;  %v571_v11 = vadd.f32 1.0, %v942_v8  ;;  %v538_v12 = vpop.f32.mrf.mxu3 }
 0x219   :  { %v576_v13 = vmul.f32 %v944_v10, %v570_v3  ;;  %945 = vpow2.f32 %v564_v9  ;;  %v539_v14 = vadd.f32 %v898_v49, %v538_v12  ;;  %vm581_vm15 = vweird.f32 %v944_v10 }
 0x21a   :  { %947 = vrcp.f32 %v571_v11  ;;  %v601_v31 = vand.u32 2147483648, %v571_v11  ;;  %v599_v34 = vand.u32 2147483647, %v571_v11  ;;  %vm1190_vm3 = vmor %vm580_vm1, %vm581_vm15  ;;  %vm595_vm4 = vweird.f32 %v571_v11 }
 0x21b   :  { %v577_v15 = vsub.f32 1.0, %v576_v13  ;;  %v857_v16 = vclamps-f32 %v539_v14, 30.0 }
 0x21c   :  { %v602_v44 = vor.u32 1.1754944e-38, %v601_v31  ;;  %vm600_vm7 = vcmp.eq.f32.partialorder %v599_v34, 8.507059e+37 }
 0x21d   :  { %v558_v17 = vsub.f32 0.0, %v857_v16  ;;  %v578_v20 = vmul.f32 %v944_v10, %v577_v15 }
 0x21f   :  { %v946_v18 = vpop.eup %945  ;;  %v566_v19 = vmul.f32 1.442695, %v558_v17  ;;  %v579_v28 = vadd.f32 %v944_v10, %v578_v20 }
 0x220   :  { %v948_v21 = vpop.eup %947  ;;  %v1187_v22 = vadd.f32 1.0, %v946_v18  ;;  %v541_v23 = vpop.f32.mrf.mxu3  ;;  %v656_v18 = vld [vmem:[%s1220_s8] sm:$0x3]  ;;  %s985_s8 = smov [#allocation2]  }
 0x221   :  { %v591_v24 = vmul.f32 %v948_v21, %v571_v11  ;;  %949 = vpow2.f32 %v566_v19  ;;  %v542_v25 = vadd.f32 %v898_v49, %v541_v23  ;;  %vm596_vm2 = vweird.f32 %v948_v21  ;;  %s752_s15 = sshll.u32 %s985_s8, 4  ;;  %s753_s15 = int_to_ptr.vmem [resolvable:$true] %s752_s15 }
 0x222   :  { %951 = vrcp.f32 %v1187_v22  ;;  %v583_v38 = vsel %vm1190_vm3, %v944_v10, %v579_v28  ;;  %vm597_vm6 = vmor %vm595_vm4, %vm596_vm2  ;;  %vm610_vm0 = vweird.f32 %v1187_v22  ;;  %v616_v58 = vand.u32 2147483648, %v1187_v22 }
 0x223   :  { %v592_v26 = vsub.f32 1.0, %v591_v24  ;;  %v858_v27 = vclamps-f32 %v542_v25, 30.0  ;;  %v588_v47 = vsel %vm585_vm5, %v587_v43, %v583_v38  ;;  %v614_v60 = vand.u32 2147483647, %v1187_v22 }
 0x224   :  { %v617_v2 = vor.u32 1.1754944e-38, %v616_v58  ;;  %v658_v19 = vperm.slane %v656_v18, 0  ;;  %v659_v20 = vperm.slane %v656_v18, 1 }
 0x225   :  { %v559_v32 = vsub.f32 0.0, %v858_v27  ;;  %v593_v33 = vmul.f32 %v948_v21, %v592_v26  ;;  %vm615_vm14 = vcmp.eq.f32.partialorder %v614_v60, 8.507059e+37 }
 0x227   :  { %v950_v36 = vpop.eup %949  ;;  %v568_v37 = vmul.f32 1.442695, %v559_v32  ;;  %v594_v39 = vadd.f32 %v948_v21, %v593_v33 }
 0x228   :  { %v952_v40 = vpop.eup %951  ;;  %v573_v41 = vadd.f32 1.0, %v950_v36  ;;  %v543_v42 = vpop.f32.mrf.mxu3 }
 0x229   :  { %953 = vpow2.f32 %v568_v37  ;;  %v598_v45 = vsel %vm597_vm6, %v948_v21, %v594_v39  ;;  %v606_v46 = vmul.f32 %v952_v40, %v1187_v22  ;;  %vm611_vm8 = vweird.f32 %v952_v40 }
 0x22a   :  { %955 = vrcp.f32 %v573_v41  ;;  %v603_v48 = vsel %vm600_vm7, %v602_v44, %v598_v45  ;;  %v631_v59 = vand.u32 2147483648, %v573_v41  ;;  %v629_v62 = vand.u32 2147483647, %v573_v41  ;;  %vm612_vm11 = vmor %vm610_vm0, %vm611_vm8 }
 0x22b   :  { %v650_v49 = vpack.c.bf16 %v603_v48, %v588_v47  ;;  %v607_v50 = vsub.f32 1.0, %v606_v46  ;;  %vm625_vm12 = vweird.f32 %v573_v41 }
 0x22c   :  { %v632_v3 = vor.u32 1.1754944e-38, %v631_v59  ;;  %vm630_vm15 = vcmp.eq.f32.partialorder %v629_v62, 8.507059e+37 }
 0x22d   :  { %867 = vmatmul.msk.bf16.vlgmr.msrb.gmra.mxu3 %vm352_vm9, %v650_v49  ;;  %870 = vmatmul.msk.bf16.vlgmr.msrb.gmra.mxu2 %vm352_vm9, %v650_v49  ;;  %v608_v52 = vmul.f32 %v952_v40, %v607_v50 }
 0x22f   :  { %v954_v51 = vpop.eup %953  ;;  %v609_v56 = vadd.f32 %v952_v40, %v608_v52 }
 0x230   :  { %v956_v53 = vpop.eup %955  ;;  %v574_v54 = vadd.f32 1.0, %v954_v51 }
 0x231   :  { %v621_v55 = vmul.f32 %v956_v53, %v573_v41  ;;  %vm626_vm10 = vweird.f32 %v956_v53  ;;  %v613_v63 = vsel %vm612_vm11, %v952_v40, %v609_v56 }
 0x232   :  { %957 = vrcp.f32 %v574_v54  ;;  %vm627_vm13 = vmor %vm625_vm12, %vm626_vm10  ;;  %v618_v6 = vsel %vm615_vm14, %v617_v2, %v613_v63  ;;  %v646_v12 = vand.u32 2147483648, %v574_v54  ;;  %vm640_vm2 = vweird.f32 %v574_v54 }
 0x233   :  { %v622_v57 = vsub.f32 1.0, %v621_v55  ;;  %v644_v13 = vand.u32 2147483647, %v574_v54 }
 0x234   :  { %v647_v15 = vor.u32 1.1754944e-38, %v646_v12 }
 0x235   :  { %v623_v61 = vmul.f32 %v956_v53, %v622_v57  ;;  %vm645_vm4 = vcmp.eq.f32.partialorder %v644_v13, 8.507059e+37 }
 0x237   :  { %v624_v0 = vadd.f32 %v956_v53, %v623_v61 }
 0x238   :  { %v958_v1 = vpop.eup %957 }
 0x239   :  { %v628_v4 = vsel %vm627_vm13, %v956_v53, %v624_v0  ;;  %v636_v5 = vmul.f32 %v958_v1, %v574_v54  ;;  %vm641_vm1 = vweird.f32 %v958_v1 }
 0x23a   :  { %v633_v7 = vsel %vm630_vm15, %v632_v3, %v628_v4  ;;  %vm642_vm3 = vmor %vm640_vm2, %vm641_vm1 }
 0x23b   :  { %v651_v8 = vpack.c.bf16 %v633_v7, %v618_v6  ;;  %v637_v9 = vsub.f32 1.0, %v636_v5 }
 0x23d   :  { %868 = vmatmul.msk.bf16.gmra.mxu3 %vm352_vm9, %v651_v8  ;;  %871 = vmatmul.msk.bf16.gmra.mxu2 %vm352_vm9, %v651_v8  ;;  %v638_v10 = vmul.f32 %v958_v1, %v637_v9 }
 0x23f   :  { %v639_v11 = vadd.f32 %v958_v1, %v638_v10 }
 0x241   :  { %v643_v14 = vsel %vm642_vm3, %v958_v1, %v639_v11 }
 0x242   :  { %v648_v16 = vsel %vm645_vm4, %v647_v15, %v643_v14 }
 0x243   :  { %v652_v17 = vpack.c.bf16 %v648_v16, %v648_v16 }
 0x24d   :  { %869 = vmatmul.msk.bf16.gmra.mxu3 %vm352_vm9, %v652_v17  ;;  %872 = vmatmul.msk.bf16.gmra.mxu2 %vm352_vm9, %v652_v17 }
 0x2b0   :  { %v701_v21 = vpop.f32.mrf.mxu3  ;;  %v724_v22 = vpop.f32.mrf.mxu2 }
 0x2b1   :  { %v702_v23 = vadd.f32 %v701_v21, %v658_v19  ;;  %v725_v24 = vadd.f32 %v724_v22, %v659_v20 }
 0x2b3   :  { %738 = vst [vmem:[#allocation2] sm:$0xff] %v702_v23 }
 0x2b4   :  { %739 = vst [vmem:[#allocation2 + $0x8] sm:$0xff] %v725_v24 }
 0x2b8   :  { %v703_v25 = vpop.f32.mrf.mxu3  ;;  %v726_v26 = vpop.f32.mrf.mxu2 }
 0x2b9   :  { %v704_v27 = vadd.f32 %v703_v25, %v658_v19  ;;  %v727_v28 = vadd.f32 %v726_v26, %v659_v20 }
 0x2bb   :  { %740 = vst [vmem:[#allocation2 + $0x10] sm:$0xff] %v704_v27 }
 0x2bc   :  { %741 = vst [vmem:[#allocation2 + $0x18] sm:$0xff] %v727_v28 }
 0x2c0   :  { %v706_v29 = vpop.f32.mrf.mxu3  ;;  %v729_v30 = vpop.f32.mrf.mxu2 }
 0x2c1   :  { %v707_v31 = vadd.f32 %v706_v29, %v658_v19  ;;  %v730_v32 = vadd.f32 %v729_v30, %v659_v20 }
 0x2c3   :  { %742 = vst [vmem:[#allocation2 + $0x20] sm:$0xff] %v707_v31 }
 0x2c4   :  { %743 = vst [vmem:[#allocation2 + $0x28] sm:$0xff] %v730_v32 }
 0x2c8   :  { %v708_v33 = vpop.f32.mrf.mxu3  ;;  %v731_v34 = vpop.f32.mrf.mxu2 }
 0x2c9   :  { %v709_v35 = vadd.f32 %v708_v33, %v658_v19  ;;  %v732_v36 = vadd.f32 %v731_v34, %v659_v20 }
 0x2cb   :  { %744 = vst [vmem:[#allocation2 + $0x30] sm:$0xff] %v709_v35 }
 0x2cc   :  { %745 = vst [vmem:[#allocation2 + $0x38] sm:$0xff] %v732_v36 }
 0x2d0   :  { %v711_v37 = vpop.f32.mrf.mxu3  ;;  %v734_v38 = vpop.f32.mrf.mxu2 }
 0x2d1   :  { %v712_v39 = vadd.f32 %v711_v37, %v658_v19  ;;  %v735_v40 = vadd.f32 %v734_v38, %v659_v20 }
 0x2d3   :  { %746 = vst [vmem:[#allocation2 + $0x40] sm:$0xff] %v712_v39 }
 0x2d4   :  { %747 = vst [vmem:[#allocation2 + $0x48] sm:$0xff] %v735_v40 }
 0x2d5   :  { %760 = dma.vmem_to_hbm [thread:$0]  %s753_s15, 1280, %s755_s18, [#allocation3], %s986_s19, %s986_s19, %s987_s20  }
 0x2d8   :  { %v713_v41 = vpop.f32.mrf.mxu3  ;;  %v736_v42 = vpop.f32.mrf.mxu2 }
 0x2d9   :  { %983 = dma.done.wait [#allocation3], 1280  }
 0x2da   :  { %984 = vsyncadd [#allocation3], 4294966016 }
 0x2db   :  { %765 = vsyncpa [#allocation3], 1 }

</bundles_post_ra>
